<compile_context>
chip_gen: v6e
topology: v6e:2x2x1
jax: 0.10.0
libtpu: 0.0.40
codegen_flags: <defaults>
</compile_context>

<pallas_src>
import functools
import math

import jax
import jax.numpy as jnp
from jax.experimental import pallas as pl
from jax.experimental.pallas import tpu as pltpu


def _layernorm(x, gamma, beta, eps):
    # Always reduced in f32 to preserve the 1e-12 eps semantics.
    x = x.astype(jnp.float32)
    mean = jnp.mean(x, axis=-1, keepdims=True)
    var = jnp.mean((x - mean) ** 2, axis=-1, keepdims=True)
    return (x - mean) * jax.lax.rsqrt(var + eps) * gamma + beta


def _gelu(x):
    # DeepSpeed CUDA kernel uses the tanh approximation of GeLU.
    return x * 0.5 * (1.0 + jnp.tanh(0.7978845608028654 * (x + 0.044715 * x * x * x)))


# ----------------------------------------------------------------------------
# Kernel 1: fused QKV projection over row tiles of the flattened [B*S, H] input.
#           One [TM,H] x [H,3H] matmul; Q/K/V are lane slices of the result.
#           The 1/sqrt(head_dim) scale is already folded into the Q weight/bias.
# ----------------------------------------------------------------------------
def qkv_proj_kernel(x_ref, w_ref, b_ref, q_ref, k_ref, v_ref, *, compute_dtype):
    x = x_ref[...].astype(compute_dtype)           # [TM, H]
    res = jnp.dot(x, w_ref[...],                   # w pre-cast to compute_dtype
                  preferred_element_type=jnp.float32) + b_ref[0]
    H = q_ref.shape[-1]
    q_ref[...] = res[:, :H].astype(q_ref.dtype)
    k_ref[...] = res[:, H:2 * H].astype(k_ref.dtype)
    v_ref[...] = res[:, 2 * H:].astype(v_ref.dtype)


# ----------------------------------------------------------------------------
# Kernel 2: multi-head attention (per-head lane slices, no head transpose)
#           + output projection + residual + LayerNorm(attn_nw/attn_nb).
#           Grid = (batch, query-tile).
# ----------------------------------------------------------------------------
def attention_kernel(q_ref, k_ref, v_ref, x_ref, mask_ref,
                     ow_ref, ob_ref, anw_ref, anb_ref,
                     o_ref, *, heads, eps, compute_dtype, exact_softmax):
    mask = mask_ref[0]                       # [1, S] additive mask over keys
    H = q_ref.shape[2]
    hd = H // heads

    ctx_parts = []
    for h in range(heads):                   # static unroll; lane slices, no relayout
        sl = slice(h * hd, (h + 1) * hd)
        q_h = q_ref[0, :, sl]                # [TQ, hd]  (pre-scaled by 1/sqrt(hd))
        k_h = k_ref[0, :, sl]                # [S,  hd]
        v_h = v_ref[0, :, sl]                # [S,  hd]

        # [TQ, hd] x [S, hd] -> [TQ, S]: contract over hd, no physical transpose.
        scores = jax.lax.dot_general(q_h, k_h, (((1,), (1,)), ((), ())),
                                     preferred_element_type=jnp.float32)
        scores = scores + mask                                  # broadcast over queries
        m = jnp.max(scores, axis=-1, keepdims=True)
        p = jnp.exp(scores - m)
        denom = jnp.sum(p, axis=-1, keepdims=True)
        if exact_softmax:
            probs = p / denom                                   # exact f32 (ref parity)
        else:
            probs = p * pl.reciprocal(denom, approx=True)       # EUP slot, frees VALU
        # attention-prob dropout = identity (eval mode)
        ctx_parts.append(jnp.dot(probs.astype(compute_dtype), v_h,
                                 preferred_element_type=jnp.float32))

    ctx = jnp.concatenate(ctx_parts, axis=-1)                   # [TQ, H] f32 in regs

    # Attention output projection (full-K matmul) + residual + LayerNorm.
    attn_out = jnp.dot(ctx.astype(compute_dtype), ow_ref[...],
                       preferred_element_type=jnp.float32) + ob_ref[0]
    add_res = attn_out + x_ref[0]                               # hidden dropout = identity
    o_ref[0] = _layernorm(add_res, anw_ref[0], anb_ref[0], eps).astype(o_ref.dtype)


# ----------------------------------------------------------------------------
# Kernel 3: FFN chunked over the intermediate dimension with an f32 accumulator
#           + residual + LayerNorm(norm_w/norm_b).  Grid = (row-tile, I-chunk).
# ----------------------------------------------------------------------------
def ffn_kernel(ff1_ref, iw_ref, ib_ref, outw_ref, outb_ref, nw_ref, nb_ref,
               o_ref, acc_ref, *, eps, compute_dtype):
    ic = pl.program_id(1)

    @pl.when(ic == 0)
    def _():
        acc_ref[...] = jnp.zeros_like(acc_ref)

    ff1 = ff1_ref[...]
    g = jnp.dot(ff1.astype(compute_dtype), iw_ref[...],
                preferred_element_type=jnp.float32) + ib_ref[0]
    act = _gelu(g)
    acc_ref[...] += jnp.dot(act.astype(compute_dtype), outw_ref[...],
                            preferred_element_type=jnp.float32)

    @pl.when(ic == pl.num_programs(1) - 1)
    def _():
        ff2 = acc_ref[...] + outb_ref[0]
        o_ref[...] = _layernorm(ff2 + ff1, nw_ref[0], nb_ref[0], eps).astype(o_ref.dtype)


# ----------------------------------------------------------------------------
# Wrapper
# ----------------------------------------------------------------------------
def deepspeed_transformer_forward(hidden_states, attention_mask, params, *,
                                  heads, eps=1e-12,
                                  compute_dtype=jnp.float32,
                                  vmem_limit_bytes=None):
    """hidden_states: [B, S, H] fp32; attention_mask: [B, 1, 1, S] additive.

    compute_dtype=jnp.bfloat16 is the recommended fast path on all generations
    (v5e/v6e/v7x MXU peak is bf16): matmul operands + the K/V/Q activation
    streams are bf16, accumulation / LayerNorm / softmax stay f32.  The default
    f32 keeps the reference forward_fp32 numerics (exact softmax division).
    """
    B, S0, H = hidden_states.shape
    assert H % heads == 0
    hd = H // heads

    # Pad seq to a multiple of 128 (lane-dense; superset of the reference's
    # pad-to-16) with fully masked keys, narrow the output back at the end.
    pad = (-S0) % 128
    x = hidden_states.astype(jnp.float32)
    mask4 = attention_mask.astype(jnp.float32)
    if pad:
        x = jnp.concatenate([x, jnp.zeros((B, pad, H), x.dtype)], axis=1)
        mask4 = jnp.concatenate(
            [mask4, jnp.full((B, 1, 1, pad), -10000.0, jnp.float32)], axis=3)
    S = S0 + pad
    mask = mask4.reshape(B, 1, S)

    I = params['inter_w'].shape[0]
    BS = B * S
    exact_softmax = (compute_dtype == jnp.float32)
    cd_bytes = jnp.dtype(compute_dtype).itemsize

    # --- host-side weight prep (one-time): transpose, fold attention scale into
    # the Q slice of the fused QKV weight/bias, pre-cast to compute_dtype. -----
    scale = 1.0 / math.sqrt(hd)
    scale_vec = jnp.concatenate(
        [jnp.full((H,), scale, jnp.float32), jnp.ones((2 * H,), jnp.float32)])
    qkvw_t = (params['attn_qkvw'].astype(jnp.float32)
              * scale_vec[:, None]).T.astype(compute_dtype)      # [H, 3H]
    qkvb = (params['attn_qkvb'].astype(jnp.float32) * scale_vec).reshape(1, -1)
    ow_t = params['attn_ow'].T.astype(compute_dtype)             # [H, H]
    iw_t = params['inter_w'].T.astype(compute_dtype)             # [H, I]
    outw_t = params['output_w'].T.astype(compute_dtype)          # [I, H]
    r2 = lambda v: v.astype(jnp.float32).reshape(1, -1)

    # Tile sizes (BS and S are multiples of 128 after padding).
    TM = 256 if BS % 256 == 0 else 128                           # QKV row tile
    TMF = next((c for c in (512, 256, 128) if BS % c == 0), 128) # FFN row tile
    TQ = 256 if S % 256 == 0 else 128                            # attention q tile
    TI = next((c for c in (512, 256, 128) if I % c == 0), I)     # FFN I-chunk

    cp_kwargs = {}
    if vmem_limit_bytes is not None:
        cp_kwargs['vmem_limit_bytes'] = vmem_limit_bytes

    def full(shape):
        # Constant (grid-invariant) block covering the whole array.
        return pl.BlockSpec(shape, lambda *idx: (0,) * len(shape))

    # ---- Kernel 1: fused QKV projection over [B*S, H] row tiles --------------
    x2 = x.reshape(BS, H)
    kern1 = functools.partial(qkv_proj_kernel, compute_dtype=compute_dtype)
    q2, k2, v2 = pl.pallas_call(
        kern1,
        out_shape=[jax.ShapeDtypeStruct((BS, H), compute_dtype)] * 3,
        grid_spec=pltpu.PrefetchScalarGridSpec(
            num_scalar_prefetch=0,
            grid=(BS // TM,),
            in_specs=[
                pl.BlockSpec((TM, H), lambda i: (i, 0)),         # x rows
                full((H, 3 * H)),                                # fused Wqkv^T (pre-cast)
                full((1, 3 * H)),                                # fused bias (f32)
            ],
            out_specs=[pl.BlockSpec((TM, H), lambda i: (i, 0))] * 3,
        ),
        compiler_params=pltpu.CompilerParams(
            dimension_semantics=("parallel",), **cp_kwargs),
        cost_estimate=pl.CostEstimate(
            flops=int(2 * BS * H * 3 * H), transcendentals=0,
            bytes_accessed=int(4 * BS * H + 3 * BS * H * cd_bytes
                               + 3 * H * H * cd_bytes)),
    )(x2, qkvw_t, qkvb)

    q3 = q2.reshape(B, S, H)
    k3 = k2.reshape(B, S, H)
    v3 = v2.reshape(B, S, H)

    # ---- Kernel 2: attention + out-proj + residual + LN1 ---------------------
    kern2 = functools.partial(attention_kernel, heads=heads, eps=eps,
                              compute_dtype=compute_dtype,
                              exact_softmax=exact_softmax)
    ff1 = pl.pallas_call(
        kern2,
        out_shape=jax.ShapeDtypeStruct((B, S, H), jnp.float32),
        grid_spec=pltpu.PrefetchScalarGridSpec(
            num_scalar_prefetch=0,
            grid=(B, S // TQ),
            in_specs=[
                pl.BlockSpec((1, TQ, H), lambda b, qi: (b, qi, 0)),  # q tile (pre-scaled)
                pl.BlockSpec((1, S, H), lambda b, qi: (b, 0, 0)),    # k (full seq, cd)
                pl.BlockSpec((1, S, H), lambda b, qi: (b, 0, 0)),    # v (full seq, cd)
                pl.BlockSpec((1, TQ, H), lambda b, qi: (b, qi, 0)),  # residual x tile
                pl.BlockSpec((1, 1, S), lambda b, qi: (b, 0, 0)),    # additive mask
                full((H, H)), full((1, H)),                          # attn_ow^T, attn_ob
                full((1, H)), full((1, H)),                          # attn_nw, attn_nb
            ],
            out_specs=pl.BlockSpec((1, TQ, H), lambda b, qi: (b, qi, 0)),
        ),
        compiler_params=pltpu.CompilerParams(
            dimension_semantics=("parallel", "parallel"), **cp_kwargs),
        cost_estimate=pl.CostEstimate(
            flops=int(4 * B * S * S * H + 2 * B * S * H * H),
            transcendentals=int(B * heads * S * S),
            # includes per-batch K/V fetch and q/x/out traffic
            bytes_accessed=int(B * S * H * (3 * cd_bytes + 2 * 4)
                               + H * H * cd_bytes + B * S * 4)),
    )(q3, k3, v3, x, mask, ow_t, r2(params['attn_ob']),
      r2(params['attn_nw']), r2(params['attn_nb']))

    # ---- Kernel 3: FFN (I-chunked) + residual + LN2 ---------------------------
    ff1_2 = ff1.reshape(BS, H)
    kern3 = functools.partial(ffn_kernel, eps=eps, compute_dtype=compute_dtype)
    out2 = pl.pallas_call(
        kern3,
        out_shape=jax.ShapeDtypeStruct((BS, H), jnp.float32),
        grid_spec=pltpu.PrefetchScalarGridSpec(
            num_scalar_prefetch=0,
            grid=(BS // TMF, I // TI),
            in_specs=[
                pl.BlockSpec((TMF, H), lambda i, ic: (i, 0)),    # ff1 tile (resident over ic)
                pl.BlockSpec((H, TI), lambda i, ic: (0, ic)),    # inter_w^T chunk (cd)
                pl.BlockSpec((1, TI), lambda i, ic: (0, ic)),    # inter_b chunk
                pl.BlockSpec((TI, H), lambda i, ic: (ic, 0)),    # output_w^T chunk (cd)
                full((1, H)), full((1, H)), full((1, H)),        # output_b, norm_w, norm_b
            ],
            out_specs=pl.BlockSpec((TMF, H), lambda i, ic: (i, 0)),
            scratch_shapes=[pltpu.VMEM((TMF, H), jnp.float32)],  # f32 accumulator
        ),
        compiler_params=pltpu.CompilerParams(
            dimension_semantics=("parallel", "arbitrary"), **cp_kwargs),
        cost_estimate=pl.CostEstimate(
            flops=int(4 * BS * H * I), transcendentals=int(BS * I),
            # weights restreamed once per row tile
            bytes_accessed=int(2 * BS * H * 4
                               + (BS // TMF) * 2 * H * I * cd_bytes)),
    )(ff1_2, iw_t, r2(params['inter_b']), outw_t, r2(params['output_b']),
      r2(params['norm_w']), r2(params['norm_b']))

    out = out2.reshape(B, S, H)
    return out[:, :S0, :].astype(hidden_states.dtype)


# ----------------------------------------------------------------------------
# Pure-JAX reference (mirrors the CUDA forward_fp32, eval mode, post-LN).
# ----------------------------------------------------------------------------
def reference_forward(hidden_states, attention_mask, params, *, heads, eps=1e-12):
    x = hidden_states.astype(jnp.float32)
    B, S, H = x.shape
    hd = H // heads
    qkv = x @ params['attn_qkvw'].T + params['attn_qkvb']
    q, k, v = jnp.split(qkv, 3, axis=-1)
    q = q.reshape(B, S, heads, hd).transpose(0, 2, 1, 3)
    k = k.reshape(B, S, heads, hd).transpose(0, 2, 1, 3)
    v = v.reshape(B, S, heads, hd).transpose(0, 2, 1, 3)
    scores = jnp.einsum('bhqd,bhkd->bhqk', q, k) / math.sqrt(hd)
    scores = scores + attention_mask.astype(jnp.float32)
    probs = jax.nn.softmax(scores, axis=-1)
    ctx = jnp.einsum('bhqk,bhkd->bhqd', probs, v)
    ctx = ctx.transpose(0, 2, 1, 3).reshape(B, S, H)
    attn_out = ctx @ params['attn_ow'].T + params['attn_ob']
    ff1 = _layernorm(attn_out + x, params['attn_nw'], params['attn_nb'], eps)
    g = ff1 @ params['inter_w'].T + params['inter_b']
    ff2 = _gelu(g) @ params['output_w'].T + params['output_b']
    return _layernorm(ff2 + ff1, params['norm_w'], params['norm_b'], eps)


def init_transformer_params(key, hidden_size, intermediate_size, initializer_range=0.02):
    """Deterministic re-implementation of init_transformer_weights (adjust_init_range=False)."""
    k1, k2, k3, k4 = jax.random.split(key, 4)
    f32 = jnp.float32
    return dict(
        attn_qkvw=initializer_range * jax.random.normal(k1, (3 * hidden_size, hidden_size), f32),
        attn_qkvb=jnp.zeros((3 * hidden_size,), f32),
        attn_ow=initializer_range * jax.random.normal(k2, (hidden_size, hidden_size), f32),
        attn_ob=jnp.zeros((hidden_size,), f32),
        attn_nw=jnp.ones((hidden_size,), f32),
        attn_nb=jnp.zeros((hidden_size,), f32),
        inter_w=initializer_range * jax.random.normal(k3, (intermediate_size, hidden_size), f32),
        inter_b=jnp.zeros((intermediate_size,), f32),
        output_w=initializer_range * jax.random.normal(k4, (hidden_size, intermediate_size), f32),
        output_b=jnp.zeros((hidden_size,), f32),
        norm_w=jnp.ones((hidden_size,), f32),
        norm_b=jnp.zeros((hidden_size,), f32),
    )


if __name__ == "__main__":
    batch, seq, hidden, heads = 2, 8, 32, 4
    intermediate = 4 * hidden

    key = jax.random.PRNGKey(0)
    kp, kx = jax.random.split(key)
    params = init_transformer_params(kp, hidden, intermediate)

    hidden_states = jax.random.normal(kx, (batch, seq, hidden), jnp.float32)
    # BERT-style additive attention mask: 0 = attend (all tokens valid here).
    attention_mask = jnp.zeros((batch, 1, 1, seq), jnp.float32)

    # Reference-parity f32 path.
    out = deepspeed_transformer_forward(hidden_states, attention_mask, params,
                                        heads=heads, eps=1e-12)
    out = jax.block_until_ready(out)
    assert out.shape == (batch, seq, hidden), out.shape
    assert bool(jnp.all(jnp.isfinite(out)))

    ref = reference_forward(hidden_states, attention_mask, params, heads=heads, eps=1e-12)
    assert bool(jnp.allclose(out, ref, rtol=2e-2, atol=2e-2)), \
        float(jnp.max(jnp.abs(out - ref)))

    # Fast bf16-operand path (f32 accumulation / LN / softmax) also compiles & runs.
    out_bf16 = deepspeed_transformer_forward(hidden_states, attention_mask, params,
                                             heads=heads, eps=1e-12,
                                             compute_dtype=jnp.bfloat16)
    out_bf16 = jax.block_until_ready(out_bf16)
    assert out_bf16.shape == (batch, seq, hidden)
    assert bool(jnp.all(jnp.isfinite(out_bf16)))

    print("KERNEL_OK")
</pallas_src>

<mosaic_0001>
module attributes {stable_mosaic.version = 11 : i64} {
  func.func @qkv_proj_kernel(%arg0: i32, %arg1: memref<256x32xf32, #tpu.memory_space<vmem>>, %arg2: memref<32x96xf32, #tpu.memory_space<vmem>>, %arg3: memref<1x96xf32, #tpu.memory_space<vmem>>, %arg4: memref<256x32xf32, #tpu.memory_space<vmem>>, %arg5: memref<256x32xf32, #tpu.memory_space<vmem>>, %arg6: memref<256x32xf32, #tpu.memory_space<vmem>>) attributes {dimension_semantics = [#tpu.dimension_semantics<parallel>], iteration_bounds = array<i64: 1>, scalar_prefetch = 0 : i64, scratch_operands = 0 : i64, tpu.core_type = #tpu.core_type<tc>, window_params = [{transform_indices = @transform_0, window_bounds = array<i64: 256, 32>}, {pipeline_mode = #tpu.pipeline_mode<synchronous>, transform_indices = @transform_1, window_bounds = array<i64: 32, 96>}, {pipeline_mode = #tpu.pipeline_mode<synchronous>, transform_indices = @transform_2, window_bounds = array<i64: 1, 96>}, {transform_indices = @transform_3, window_bounds = array<i64: 256, 32>}, {transform_indices = @transform_4, window_bounds = array<i64: 256, 32>}, {transform_indices = @transform_5, window_bounds = array<i64: 256, 32>}]} {
    %c0 = arith.constant 0 : index
    %c0_0 = arith.constant 0 : index
    %0 = vector.load %arg1[%c0, %c0_0] : memref<256x32xf32, #tpu.memory_space<vmem>>, vector<256x32xf32>
    %c0_1 = arith.constant 0 : index
    %c0_2 = arith.constant 0 : index
    %1 = vector.load %arg2[%c0_1, %c0_2] : memref<32x96xf32, #tpu.memory_space<vmem>>, vector<32x96xf32>
    %cst = arith.constant dense<0.000000e+00> : vector<256x96xf32>
    %2 = tpu.matmul %0, %1, %cst {dimension_numbers = #tpu.dot_dimension_numbers<[1], [0], [0], [1], [0, 0, 1, 1], [], []>} : vector<256x32xf32>, vector<32x96xf32>, vector<256x96xf32> -> vector<256x96xf32>
    %c0_3 = arith.constant 0 : index
    %c0_4 = arith.constant 0 : index
    %3 = vector.load %arg3[%c0_3, %c0_4] : memref<1x96xf32, #tpu.memory_space<vmem>>, vector<1x96xf32>
    %4 = vector.shape_cast %3 : vector<1x96xf32> to vector<96xf32>
    %5 = vector.shape_cast %4 : vector<96xf32> to vector<1x96xf32>
    %6 = vector.broadcast %5 : vector<1x96xf32> to vector<256x96xf32>
    %7 = arith.addf %2, %6 : vector<256x96xf32>
    %8 = vector.extract_strided_slice %7 {offsets = [0, 0], sizes = [256, 32], strides = [1, 1]} : vector<256x96xf32> to vector<256x32xf32>
    %c0_5 = arith.constant 0 : index
    %c0_6 = arith.constant 0 : index
    %9 = vector.load %arg4[%c0_5, %c0_6] : memref<256x32xf32, #tpu.memory_space<vmem>>, vector<256x32xf32>
    tpu.vector_store %arg4[%c0_5, %c0_6], %8 {strides = array<i32>} : memref<256x32xf32, #tpu.memory_space<vmem>>, vector<256x32xf32>,
    %10 = vector.extract_strided_slice %7 {offsets = [0, 32], sizes = [256, 32], strides = [1, 1]} : vector<256x96xf32> to vector<256x32xf32>
    %c0_7 = arith.constant 0 : index
    %c0_8 = arith.constant 0 : index
    %11 = vector.load %arg5[%c0_7, %c0_8] : memref<256x32xf32, #tpu.memory_space<vmem>>, vector<256x32xf32>
    tpu.vector_store %arg5[%c0_7, %c0_8], %10 {strides = array<i32>} : memref<256x32xf32, #tpu.memory_space<vmem>>, vector<256x32xf32>,
    %12 = vector.extract_strided_slice %7 {offsets = [0, 64], sizes = [256, 32], strides = [1, 1]} : vector<256x96xf32> to vector<256x32xf32>
    %c0_9 = arith.constant 0 : index
    %c0_10 = arith.constant 0 : index
    %13 = vector.load %arg6[%c0_9, %c0_10] : memref<256x32xf32, #tpu.memory_space<vmem>>, vector<256x32xf32>
    tpu.vector_store %arg6[%c0_9, %c0_10], %12 {strides = array<i32>} : memref<256x32xf32, #tpu.memory_space<vmem>>, vector<256x32xf32>,
    return
  }
  func.func @transform_0(%arg0: i32) -> (i32, i32) {
    %c0_i32 = arith.constant 0 : i32
    %c0_i32_0 = arith.constant 0 : i32
    return %arg0, %c0_i32 : i32, i32
  }
  func.func @transform_1(%arg0: i32) -> (i32, i32) {
    %c0_i32 = arith.constant 0 : i32
    %c0_i32_0 = arith.constant 0 : i32
    %c0_i32_1 = arith.constant 0 : i32
    return %c0_i32, %c0_i32_0 : i32, i32
  }
  func.func @transform_2(%arg0: i32) -> (i32, i32) {
    %c0_i32 = arith.constant 0 : i32
    %c0_i32_0 = arith.constant 0 : i32
    %c0_i32_1 = arith.constant 0 : i32
    return %c0_i32, %c0_i32_0 : i32, i32
  }
  func.func @transform_3(%arg0: i32) -> (i32, i32) {
    %c0_i32 = arith.constant 0 : i32
    %c0_i32_0 = arith.constant 0 : i32
    return %arg0, %c0_i32 : i32, i32
  }
  func.func @transform_4(%arg0: i32) -> (i32, i32) {
    %c0_i32 = arith.constant 0 : i32
    %c0_i32_0 = arith.constant 0 : i32
    return %arg0, %c0_i32 : i32, i32
  }
  func.func @transform_5(%arg0: i32) -> (i32, i32) {
    %c0_i32 = arith.constant 0 : i32
    %c0_i32_0 = arith.constant 0 : i32
    return %arg0, %c0_i32 : i32, i32
  }
}

</mosaic_0001>

<bundles_post_ra>
// kernel: tpu_custom_call.1
= control target key start
LH: loop header
LB: loop body
LE: loop exit
PB: predicated region body
PF: predicated region fallthrough
CT: control target
= control target key end

     0   :  { %vm60_vm0 = vcmask 261120   ;;  %s850_s21 = smov 64   ;;  %s1606_s1 = inlined_call_operand.vmem [shape: f32[32,96], index: 1, kind: input, shape index: {}]   ;;  %s1607_s0 = inlined_call_operand.vmem [shape: f32[256,32], index: 0, kind: input, shape index: {}]   ;;  %s1608_s2 = inlined_call_operand.vmem [shape: f32[1,96], index: 2, kind: input, shape index: {}]   ;;  %s1609_s3 = inlined_call_operand.vmem [shape: f32[256,32], index: 3, kind: output, shape index: {0}]   ;;  %s1610_s4 = inlined_call_operand.vmem [shape: f32[256,32], index: 4, kind: output, shape index: {1}]   ;;  %s1611_s5 = inlined_call_operand.vmem [shape: f32[256,32], index: 5, kind: output, shape index: {2}]  }
   0x1   :  { %v52_v0 = vld [vmem:[%s1606_s1 + $0x18] sm:$0xff]  ;;  %v51_v1 = vld [vmem:[%s1606_s1 + $0x10] sm:$0xff]  ;;  %v50_v2 = vld [vmem:[%s1606_s1 + $0x8] sm:$0xff] }
   0x2   :  { %783 = vmatprep.subr.mxu0 %v52_v0  ;;  %839 = vmatprep.subr.mxu1 %v52_v0  ;;  %v49_v3 = vld [vmem:[%s1606_s1] sm:$0xff]  ;;  %v18_v6 = vld [vmem:[%s1607_s0 + $0x8] sm:$0xff]  ;;  %v19_v8 = vld [vmem:[%s1607_s0 + $0x10] sm:$0xff] }
   0x3   :  { %784 = vmatpush3.msra.mxu0 %v52_v0  ;;  %843 = vmatpush3.msra.mxu1 %v52_v0  ;;  %v17_v4 = vld [vmem:[%s1607_s0] sm:$0xff]  ;;  %v34_v7 = vld [vmem:[%s1607_s0 + $0x88] sm:$0xff]  ;;  %v35_v9 = vld [vmem:[%s1607_s0 + $0x90] sm:$0xff] }
   0x4   :  { %785 = vmatprep.subr.mxu0 %v51_v1  ;;  %840 = vmatprep.subr.mxu1 %v51_v1  ;;  %v33_v5 = vld [vmem:[%s1607_s0 + $0x80] sm:$0xff]  ;;  %v20_v10 = vld [vmem:[%s1607_s0 + $0x18] sm:$0xff]  ;;  %v22_v14 = vld [vmem:[%s1607_s0 + $0x28] sm:$0xff] }
   0x5   :  { %786 = vmatpush3.msra.mxu0 %v51_v1  ;;  %844 = vmatpush3.msra.mxu1 %v51_v1  ;;  %v36_v11 = vld [vmem:[%s1607_s0 + $0x98] sm:$0xff]  ;;  %v21_v12 = vld [vmem:[%s1607_s0 + $0x20] sm:$0xff]  ;;  %v38_v15 = vld [vmem:[%s1607_s0 + $0xa8] sm:$0xff] }
   0x6   :  { %787 = vmatprep.subr.mxu0 %v50_v2  ;;  %841 = vmatprep.subr.mxu1 %v50_v2  ;;  %v37_v13 = vld [vmem:[%s1607_s0 + $0xa0] sm:$0xff]  ;;  %v23_v16 = vld [vmem:[%s1607_s0 + $0x30] sm:$0xff]  ;;  %v24_v18 = vld [vmem:[%s1607_s0 + $0x38] sm:$0xff] }
   0x7   :  { %788 = vmatpush3.msra.mxu0 %v50_v2  ;;  %845 = vmatpush3.msra.mxu1 %v50_v2  ;;  %v39_v17 = vld [vmem:[%s1607_s0 + $0xb0] sm:$0xff]  ;;  %v40_v19 = vld [vmem:[%s1607_s0 + $0xb8] sm:$0xff]  ;;  %v25_v20 = vld [vmem:[%s1607_s0 + $0x40] sm:$0xff] }
   0x8   :  { %789 = vmatprep.subr.mxu0 %v49_v3  ;;  %842 = vmatprep.subr.mxu1 %v49_v3  ;;  %v41_v21 = vld [vmem:[%s1607_s0 + $0xc0] sm:$0xff]  ;;  %v26_v22 = vld [vmem:[%s1607_s0 + $0x48] sm:$0xff]  ;;  %v27_v24 = vld [vmem:[%s1607_s0 + $0x50] sm:$0xff] }
   0x9   :  { %790 = vmatpush3.msra.mxu0 %v49_v3  ;;  %846 = vmatpush3.msra.mxu1 %v49_v3  ;;  %v42_v23 = vld [vmem:[%s1607_s0 + $0xc8] sm:$0xff]  ;;  %v43_v25 = vld [vmem:[%s1607_s0 + $0xd0] sm:$0xff]  ;;  %v28_v26 = vld [vmem:[%s1607_s0 + $0x58] sm:$0xff] }
   0xa   :  { %791 = vmatprep.mubr.msk.f32.mxu0 %vm60_vm0, %v17_v4  ;;  %815 = vmatprep.mubr.msk.f32.mxu1 %vm60_vm0, %v33_v5  ;;  %v44_v27 = vld [vmem:[%s1607_s0 + $0xd8] sm:$0xff]  ;;  %v29_v28 = vld [vmem:[%s1607_s0 + $0x60] sm:$0xff]  ;;  %v30_v30 = vld [vmem:[%s1607_s0 + $0x68] sm:$0xff] }
   0xb   :  { %792 = vmatmul.mubr.msk.f32.vlgmr.msra.gmra.mxu0 %vm60_vm0, %v18_v6  ;;  %816 = vmatmul.mubr.msk.f32.vlgmr.msra.gmra.mxu1 %vm60_vm0, %v34_v7  ;;  %v45_v29 = vld [vmem:[%s1607_s0 + $0xe0] sm:$0xff]  ;;  %v46_v31 = vld [vmem:[%s1607_s0 + $0xe8] sm:$0xff]  ;;  %v31_v32 = vld [vmem:[%s1607_s0 + $0x70] sm:$0xff] }
   0xc   :  { %794 = vmatprep.mubr.msk.f32.mxu0 %vm60_vm0, %v19_v8  ;;  %818 = vmatprep.mubr.msk.f32.mxu1 %vm60_vm0, %v35_v9  ;;  %v47_v33 = vld [vmem:[%s1607_s0 + $0xf0] sm:$0xff]  ;;  %v32_v34 = vld [vmem:[%s1607_s0 + $0x78] sm:$0xff]  ;;  %v1024_v36 = vld [vmem:[%s1608_s2] ss:$0 sm:$0xff]  ;;  %s849_s2 = smov 96  }
   0xd   :  { %v48_v35 = vld [vmem:[%s1607_s0 + $0xf8] sm:$0xff] }
   0xf   :  { %795 = vmatmul.mubr.msk.f32.gmra.mxu0 %vm60_vm0, %v20_v10  ;;  %819 = vmatmul.mubr.msk.f32.gmra.mxu1 %vm60_vm0, %v36_v11 }
  0x10   :  { %797 = vmatprep.mubr.msk.f32.mxu0 %vm60_vm0, %v21_v12  ;;  %821 = vmatprep.mubr.msk.f32.mxu1 %vm60_vm0, %v37_v13 }
  0x13   :  { %798 = vmatmul.mubr.msk.f32.gmra.mxu0 %vm60_vm0, %v22_v14  ;;  %822 = vmatmul.mubr.msk.f32.gmra.mxu1 %vm60_vm0, %v38_v15 }
  0x14   :  { %800 = vmatprep.mubr.msk.f32.mxu0 %vm60_vm0, %v23_v16  ;;  %824 = vmatprep.mubr.msk.f32.mxu1 %vm60_vm0, %v39_v17 }
  0x17   :  { %801 = vmatmul.mubr.msk.f32.gmra.mxu0 %vm60_vm0, %v24_v18  ;;  %825 = vmatmul.mubr.msk.f32.gmra.mxu1 %vm60_vm0, %v40_v19 }
  0x18   :  { %803 = vmatprep.mubr.msk.f32.mxu0 %vm60_vm0, %v25_v20  ;;  %827 = vmatprep.mubr.msk.f32.mxu1 %vm60_vm0, %v41_v21 }
  0x1b   :  { %804 = vmatmul.mubr.msk.f32.gmra.mxu0 %vm60_vm0, %v26_v22  ;;  %828 = vmatmul.mubr.msk.f32.gmra.mxu1 %vm60_vm0, %v42_v23 }
  0x1c   :  { %806 = vmatprep.mubr.msk.f32.mxu0 %vm60_vm0, %v27_v24  ;;  %830 = vmatprep.mubr.msk.f32.mxu1 %vm60_vm0, %v43_v25 }
  0x1f   :  { %807 = vmatmul.mubr.msk.f32.gmra.mxu0 %vm60_vm0, %v28_v26  ;;  %831 = vmatmul.mubr.msk.f32.gmra.mxu1 %vm60_vm0, %v44_v27 }
  0x20   :  { %809 = vmatprep.mubr.msk.f32.mxu0 %vm60_vm0, %v29_v28  ;;  %833 = vmatprep.mubr.msk.f32.mxu1 %vm60_vm0, %v45_v29 }
  0x23   :  { %810 = vmatmul.mubr.msk.f32.gmra.mxu0 %vm60_vm0, %v30_v30  ;;  %834 = vmatmul.mubr.msk.f32.gmra.mxu1 %vm60_vm0, %v46_v31 }
  0x24   :  { %812 = vmatprep.mubr.msk.f32.mxu0 %vm60_vm0, %v31_v32  ;;  %836 = vmatprep.mubr.msk.f32.mxu1 %vm60_vm0, %v47_v33 }
  0x27   :  { %813 = vmatmul.mubr.msk.f32.gmra.mxu0 %vm60_vm0, %v32_v34  ;;  %837 = vmatmul.mubr.msk.f32.gmra.mxu1 %vm60_vm0, %v48_v35 }
  0xcb   :  { %v793_v37 = vpop.f32.mrf.mxu0  ;;  %v817_v38 = vpop.f32.mrf.mxu1 }
  0xcc   :  { %v229_v39 = vadd.f32 %v793_v37, %v1024_v36  ;;  %v309_v40 = vadd.f32 %v817_v38, %v1024_v36 }
  0xcd   :  { %v223_v41 = vpop.f32.mrf.mxu0  ;;  %v303_v42 = vpop.f32.mrf.mxu1 }
  0xce   :  { %383 = vst.msk [vmem:[%s1609_s3 + $0x8] sm:$0xff] %vm60_vm0, %v229_v39  ;;  %399 = vst.msk [vmem:[%s1609_s3 + $0x88] sm:$0xff] %vm60_vm0, %v309_v40  ;;  %v224_v43 = vadd.f32 %v1024_v36, %v223_v41  ;;  %v304_v44 = vadd.f32 %v1024_v36, %v303_v42  ;;  %480 = vrot.lane.b32.xlu1 %v309_v40, %s849_s2  ;;  %448 = vrot.lane.b32.xlu0 %v229_v39, %s849_s2 }
  0xcf   :  { %v796_v45 = vpop.f32.mrf.mxu0  ;;  %v820_v46 = vpop.f32.mrf.mxu1 }
  0xd0   :  { %382 = vst.msk [vmem:[%s1609_s3] sm:$0xff] %vm60_vm0, %v224_v43  ;;  %398 = vst.msk [vmem:[%s1609_s3 + $0x80] sm:$0xff] %vm60_vm0, %v304_v44  ;;  %v239_v47 = vadd.f32 %v796_v45, %v1024_v36  ;;  %v1050_v48 = vadd.f32 %v820_v46, %v1024_v36 }
  0xd1   :  { %v233_v49 = vpop.f32.mrf.mxu0  ;;  %v313_v50 = vpop.f32.mrf.mxu1 }
  0xd2   :  { %576 = vrot.lane.b32.xlu1 %v229_v39, %s850_s21  ;;  %446 = vrot.lane.b32.xlu0 %v224_v43, %s849_s2  ;;  %385 = vst.msk [vmem:[%s1609_s3 + $0x18] sm:$0xff] %vm60_vm0, %v239_v47  ;;  %v1059_v51 = vadd.f32 %v1024_v36, %v233_v49  ;;  %401 = vst.msk [vmem:[%s1609_s3 + $0x98] sm:$0xff] %vm60_vm0, %v1050_v48  ;;  %v1067_v52 = vadd.f32 %v1024_v36, %v313_v50 }
  0xd3   :  { %v799_v53 = vpop.f32.mrf.mxu0  ;;  %v823_v54 = vpop.f32.mrf.mxu1 }
  0xd4   :  { %384 = vst.msk [vmem:[%s1609_s3 + $0x10] sm:$0xff] %vm60_vm0, %v1059_v51  ;;  %400 = vst.msk [vmem:[%s1609_s3 + $0x90] sm:$0xff] %vm60_vm0, %v1067_v52  ;;  %v1080_v55 = vadd.f32 %v799_v53, %v1024_v36  ;;  %v1083_v56 = vadd.f32 %v823_v54, %v1024_v36 }
  0xd5   :  { %v243_v57 = vpop.f32.mrf.mxu0  ;;  %v323_v58 = vpop.f32.mrf.mxu1 }
  0xd6   :  { %608 = vrot.lane.b32.xlu1 %v309_v40, %s850_s21  ;;  %478 = vrot.lane.b32.xlu0 %v304_v44, %s849_s2  ;;  %387 = vst.msk [vmem:[%s1609_s3 + $0x28] sm:$0xff] %vm60_vm0, %v1080_v55  ;;  %v1093_v59 = vadd.f32 %v1024_v36, %v243_v57  ;;  %403 = vst.msk [vmem:[%s1609_s3 + $0xa8] sm:$0xff] %vm60_vm0, %v1083_v56  ;;  %v1101_v60 = vadd.f32 %v1024_v36, %v323_v58 }
  0xd7   :  { %v802_v61 = vpop.f32.mrf.mxu0  ;;  %v826_v62 = vpop.f32.mrf.mxu1 }
  0xd8   :  { %386 = vst.msk [vmem:[%s1609_s3 + $0x20] sm:$0xff] %vm60_vm0, %v1093_v59  ;;  %402 = vst.msk [vmem:[%s1609_s3 + $0xa0] sm:$0xff] %vm60_vm0, %v1101_v60  ;;  %v1114_v63 = vadd.f32 %v802_v61, %v1024_v36  ;;  %v1117_v0 = vadd.f32 %v826_v62, %v1024_v36 }
  0xd9   :  { %v253_v1 = vpop.f32.mrf.mxu0  ;;  %v333_v2 = vpop.f32.mrf.mxu1 }
  0xda   :  { %452 = vrot.lane.b32.xlu1 %v239_v47, %s849_s2  ;;  %574 = vrot.lane.b32.xlu0 %v224_v43, %s850_s21  ;;  %389 = vst.msk [vmem:[%s1609_s3 + $0x38] sm:$0xff] %vm60_vm0, %v1114_v63  ;;  %v1127_v3 = vadd.f32 %v1024_v36, %v253_v1  ;;  %405 = vst.msk [vmem:[%s1609_s3 + $0xb8] sm:$0xff] %vm60_vm0, %v1117_v0  ;;  %v1135_v4 = vadd.f32 %v1024_v36, %v333_v2 }
  0xdb   :  { %v805_v5 = vpop.f32.mrf.mxu0  ;;  %v829_v6 = vpop.f32.mrf.mxu1 }
  0xdc   :  { %388 = vst.msk [vmem:[%s1609_s3 + $0x30] sm:$0xff] %vm60_vm0, %v1127_v3  ;;  %404 = vst.msk [vmem:[%s1609_s3 + $0xb0] sm:$0xff] %vm60_vm0, %v1135_v4  ;;  %v1148_v7 = vadd.f32 %v805_v5, %v1024_v36  ;;  %v1151_v8 = vadd.f32 %v829_v6, %v1024_v36 }
  0xdd   :  { %v263_v9 = vpop.f32.mrf.mxu0  ;;  %v343_v10 = vpop.f32.mrf.mxu1 }
  0xde   :  { %484 = vrot.lane.b32.xlu1 %v1050_v48, %s849_s2  ;;  %606 = vrot.lane.b32.xlu0 %v304_v44, %s850_s21  ;;  %391 = vst.msk [vmem:[%s1609_s3 + $0x48] sm:$0xff] %vm60_vm0, %v1148_v7  ;;  %v1162_v11 = vadd.f32 %v1024_v36, %v263_v9  ;;  %407 = vst.msk [vmem:[%s1609_s3 + $0xc8] sm:$0xff] %vm60_vm0, %v1151_v8  ;;  %v1170_v12 = vadd.f32 %v1024_v36, %v343_v10 }
  0xdf   :  { %v808_v13 = vpop.f32.mrf.mxu0  ;;  %v832_v14 = vpop.f32.mrf.mxu1 }
  0xe0   :  { %390 = vst.msk [vmem:[%s1609_s3 + $0x40] sm:$0xff] %vm60_vm0, %v1162_v11  ;;  %406 = vst.msk [vmem:[%s1609_s3 + $0xc0] sm:$0xff] %vm60_vm0, %v1170_v12  ;;  %v1183_v15 = vadd.f32 %v808_v13, %v1024_v36  ;;  %v1186_v16 = vadd.f32 %v832_v14, %v1024_v36 }
  0xe1   :  { %v273_v17 = vpop.f32.mrf.mxu0  ;;  %v353_v18 = vpop.f32.mrf.mxu1 }
  0xe2   :  { %580 = vrot.lane.b32.xlu1 %v239_v47, %s850_s21  ;;  %482 = vrot.lane.b32.xlu0 %v1067_v52, %s849_s2  ;;  %393 = vst.msk [vmem:[%s1609_s3 + $0x58] sm:$0xff] %vm60_vm0, %v1183_v15  ;;  %v274_v19 = vadd.f32 %v1024_v36, %v273_v17  ;;  %409 = vst.msk [vmem:[%s1609_s3 + $0xd8] sm:$0xff] %vm60_vm0, %v1186_v16  ;;  %v354_v20 = vadd.f32 %v1024_v36, %v353_v18 }
  0xe3   :  { %v811_v21 = vpop.f32.mrf.mxu0  ;;  %v835_v22 = vpop.f32.mrf.mxu1 }
  0xe4   :  { %392 = vst.msk [vmem:[%s1609_s3 + $0x50] sm:$0xff] %vm60_vm0, %v274_v19  ;;  %408 = vst.msk [vmem:[%s1609_s3 + $0xd0] sm:$0xff] %vm60_vm0, %v354_v20  ;;  %v289_v23 = vadd.f32 %v811_v21, %v1024_v36  ;;  %v369_v24 = vadd.f32 %v835_v22, %v1024_v36 }
  0xe5   :  { %v283_v25 = vpop.f32.mrf.mxu0  ;;  %v363_v26 = vpop.f32.mrf.mxu1 }
  0xe6   :  { %612 = vrot.lane.b32.xlu1 %v1050_v48, %s850_s21  ;;  %578 = vrot.lane.b32.xlu0 %v1059_v51, %s850_s21  ;;  %395 = vst.msk [vmem:[%s1609_s3 + $0x68] sm:$0xff] %vm60_vm0, %v289_v23  ;;  %v284_v27 = vadd.f32 %v1024_v36, %v283_v25  ;;  %411 = vst.msk [vmem:[%s1609_s3 + $0xe8] sm:$0xff] %vm60_vm0, %v369_v24  ;;  %v364_v28 = vadd.f32 %v1024_v36, %v363_v26 }
  0xe7   :  { %v814_v29 = vpop.f32.mrf.mxu0  ;;  %v838_v30 = vpop.f32.mrf.mxu1 }
  0xe8   :  { %394 = vst.msk [vmem:[%s1609_s3 + $0x60] sm:$0xff] %vm60_vm0, %v284_v27  ;;  %410 = vst.msk [vmem:[%s1609_s3 + $0xe0] sm:$0xff] %vm60_vm0, %v364_v28  ;;  %v1236_v31 = vadd.f32 %v814_v29, %v1024_v36  ;;  %v1239_v32 = vadd.f32 %v838_v30, %v1024_v36 }
  0xe9   :  { %v293_v33 = vpop.f32.mrf.mxu0  ;;  %v373_v34 = vpop.f32.mrf.mxu1 }
  0xea   :  { %450 = vrot.lane.b32.xlu1 %v1059_v51, %s849_s2  ;;  %610 = vrot.lane.b32.xlu0 %v1067_v52, %s850_s21  ;;  %397 = vst.msk [vmem:[%s1609_s3 + $0x78] sm:$0xff] %vm60_vm0, %v1236_v31  ;;  %v294_v35 = vadd.f32 %v1024_v36, %v293_v33  ;;  %413 = vst.msk [vmem:[%s1609_s3 + $0xf8] sm:$0xff] %vm60_vm0, %v1239_v32  ;;  %v1257_v37 = vadd.f32 %v1024_v36, %v373_v34 }
  0xec   :  { %396 = vst.msk [vmem:[%s1609_s3 + $0x70] sm:$0xff] %vm60_vm0, %v294_v35  ;;  %412 = vst.msk [vmem:[%s1609_s3 + $0xf0] sm:$0xff] %vm60_vm0, %v1257_v37 }
  0xee   :  { %456 = vrot.lane.b32.xlu1 %v1080_v55, %s849_s2  ;;  %454 = vrot.lane.b32.xlu0 %v1093_v59, %s849_s2 }
  0xf2   :  { %488 = vrot.lane.b32.xlu1 %v1083_v56, %s849_s2  ;;  %486 = vrot.lane.b32.xlu0 %v1101_v60, %s849_s2 }
  0xf6   :  { %584 = vrot.lane.b32.xlu1 %v1080_v55, %s850_s21  ;;  %582 = vrot.lane.b32.xlu0 %v1093_v59, %s850_s21 }
  0xfa   :  { %616 = vrot.lane.b32.xlu1 %v1083_v56, %s850_s21  ;;  %614 = vrot.lane.b32.xlu0 %v1101_v60, %s850_s21 }
  0xfe   :  { %460 = vrot.lane.b32.xlu1 %v1114_v63, %s849_s2  ;;  %458 = vrot.lane.b32.xlu0 %v1127_v3, %s849_s2 }
 0x102   :  { %492 = vrot.lane.b32.xlu1 %v1117_v0, %s849_s2  ;;  %490 = vrot.lane.b32.xlu0 %v1135_v4, %s849_s2 }
 0x106   :  { %588 = vrot.lane.b32.xlu1 %v1114_v63, %s850_s21  ;;  %586 = vrot.lane.b32.xlu0 %v1127_v3, %s850_s21 }
 0x10a   :  { %620 = vrot.lane.b32.xlu1 %v1117_v0, %s850_s21  ;;  %618 = vrot.lane.b32.xlu0 %v1135_v4, %s850_s21 }
 0x10e   :  { %464 = vrot.lane.b32.xlu1 %v1148_v7, %s849_s2  ;;  %462 = vrot.lane.b32.xlu0 %v1162_v11, %s849_s2 }
 0x112   :  { %496 = vrot.lane.b32.xlu1 %v1151_v8, %s849_s2  ;;  %494 = vrot.lane.b32.xlu0 %v1170_v12, %s849_s2 }
 0x116   :  { %592 = vrot.lane.b32.xlu1 %v1148_v7, %s850_s21  ;;  %590 = vrot.lane.b32.xlu0 %v1162_v11, %s850_s21 }
 0x11a   :  { %624 = vrot.lane.b32.xlu1 %v1151_v8, %s850_s21  ;;  %622 = vrot.lane.b32.xlu0 %v1170_v12, %s850_s21 }
 0x11e   :  { %468 = vrot.lane.b32.xlu1 %v1183_v15, %s849_s2  ;;  %466 = vrot.lane.b32.xlu0 %v274_v19, %s849_s2 }
 0x122   :  { %500 = vrot.lane.b32.xlu1 %v1186_v16, %s849_s2  ;;  %498 = vrot.lane.b32.xlu0 %v354_v20, %s849_s2 }
 0x126   :  { %596 = vrot.lane.b32.xlu1 %v1183_v15, %s850_s21  ;;  %594 = vrot.lane.b32.xlu0 %v274_v19, %s850_s21 }
 0x12a   :  { %628 = vrot.lane.b32.xlu1 %v1186_v16, %s850_s21  ;;  %626 = vrot.lane.b32.xlu0 %v354_v20, %s850_s21 }
 0x12e   :  { %472 = vrot.lane.b32.xlu1 %v289_v23, %s849_s2  ;;  %470 = vrot.lane.b32.xlu0 %v284_v27, %s849_s2 }
 0x132   :  { %504 = vrot.lane.b32.xlu1 %v369_v24, %s849_s2  ;;  %502 = vrot.lane.b32.xlu0 %v364_v28, %s849_s2 }
 0x136   :  { %600 = vrot.lane.b32.xlu1 %v289_v23, %s850_s21  ;;  %598 = vrot.lane.b32.xlu0 %v284_v27, %s850_s21 }
 0x13a   :  { %632 = vrot.lane.b32.xlu1 %v369_v24, %s850_s21  ;;  %630 = vrot.lane.b32.xlu0 %v364_v28, %s850_s21 }
 0x13e   :  { %476 = vrot.lane.b32.xlu1 %v1236_v31, %s849_s2  ;;  %474 = vrot.lane.b32.xlu0 %v294_v35, %s849_s2 }
 0x140   :  { %v481_v36 = vpop.permute.xlu1 %480  ;;  %v449_v38 = vpop.permute.xlu0 %448 }
 0x141   :  { %559 = vst.msk [vmem:[%s1610_s4 + $0x88] sm:$0xff] %vm60_vm0, %v481_v36  ;;  %543 = vst.msk [vmem:[%s1610_s4 + $0x8] sm:$0xff] %vm60_vm0, %v449_v38 }
 0x142   :  { %508 = vrot.lane.b32.xlu1 %v1239_v32, %s849_s2  ;;  %506 = vrot.lane.b32.xlu0 %v1257_v37, %s849_s2 }
 0x144   :  { %v577_v39 = vpop.permute.xlu1 %576  ;;  %v447_v40 = vpop.permute.xlu0 %446 }
 0x145   :  { %671 = vst.msk [vmem:[%s1611_s5 + $0x8] sm:$0xff] %vm60_vm0, %v577_v39  ;;  %542 = vst.msk [vmem:[%s1610_s4] sm:$0xff] %vm60_vm0, %v447_v40 }
 0x146   :  { %604 = vrot.lane.b32.xlu1 %v1236_v31, %s850_s21  ;;  %602 = vrot.lane.b32.xlu0 %v294_v35, %s850_s21 }
 0x148   :  { %v609_v41 = vpop.permute.xlu1 %608  ;;  %v479_v42 = vpop.permute.xlu0 %478 }
 0x149   :  { %687 = vst.msk [vmem:[%s1611_s5 + $0x88] sm:$0xff] %vm60_vm0, %v609_v41  ;;  %558 = vst.msk [vmem:[%s1610_s4 + $0x80] sm:$0xff] %vm60_vm0, %v479_v42 }
 0x14a   :  { %636 = vrot.lane.b32.xlu1 %v1239_v32, %s850_s21  ;;  %634 = vrot.lane.b32.xlu0 %v1257_v37, %s850_s21 }
 0x14c   :  { %v453_v43 = vpop.permute.xlu1 %452  ;;  %v575_v44 = vpop.permute.xlu0 %574 }
 0x14d   :  { %545 = vst.msk [vmem:[%s1610_s4 + $0x18] sm:$0xff] %vm60_vm0, %v453_v43  ;;  %670 = vst.msk [vmem:[%s1611_s5] sm:$0xff] %vm60_vm0, %v575_v44 }
 0x150   :  { %v485_v45 = vpop.permute.xlu1 %484  ;;  %v607_v46 = vpop.permute.xlu0 %606 }
 0x151   :  { %561 = vst.msk [vmem:[%s1610_s4 + $0x98] sm:$0xff] %vm60_vm0, %v485_v45  ;;  %686 = vst.msk [vmem:[%s1611_s5 + $0x80] sm:$0xff] %vm60_vm0, %v607_v46 }
 0x154   :  { %v581_v47 = vpop.permute.xlu1 %580  ;;  %v483_v48 = vpop.permute.xlu0 %482 }
 0x155   :  { %673 = vst.msk [vmem:[%s1611_s5 + $0x18] sm:$0xff] %vm60_vm0, %v581_v47  ;;  %560 = vst.msk [vmem:[%s1610_s4 + $0x90] sm:$0xff] %vm60_vm0, %v483_v48 }
 0x158   :  { %v613_v49 = vpop.permute.xlu1 %612  ;;  %v579_v50 = vpop.permute.xlu0 %578 }
 0x159   :  { %689 = vst.msk [vmem:[%s1611_s5 + $0x98] sm:$0xff] %vm60_vm0, %v613_v49  ;;  %672 = vst.msk [vmem:[%s1611_s5 + $0x10] sm:$0xff] %vm60_vm0, %v579_v50 }
 0x15c   :  { %v451_v51 = vpop.permute.xlu1 %450  ;;  %v611_v52 = vpop.permute.xlu0 %610 }
 0x15d   :  { %544 = vst.msk [vmem:[%s1610_s4 + $0x10] sm:$0xff] %vm60_vm0, %v451_v51  ;;  %688 = vst.msk [vmem:[%s1611_s5 + $0x90] sm:$0xff] %vm60_vm0, %v611_v52 }
 0x160   :  { %v457_v53 = vpop.permute.xlu1 %456  ;;  %v455_v54 = vpop.permute.xlu0 %454 }
 0x161   :  { %547 = vst.msk [vmem:[%s1610_s4 + $0x28] sm:$0xff] %vm60_vm0, %v457_v53  ;;  %546 = vst.msk [vmem:[%s1610_s4 + $0x20] sm:$0xff] %vm60_vm0, %v455_v54 }
 0x164   :  { %v489_v55 = vpop.permute.xlu1 %488  ;;  %v487_v56 = vpop.permute.xlu0 %486 }
 0x165   :  { %563 = vst.msk [vmem:[%s1610_s4 + $0xa8] sm:$0xff] %vm60_vm0, %v489_v55  ;;  %562 = vst.msk [vmem:[%s1610_s4 + $0xa0] sm:$0xff] %vm60_vm0, %v487_v56 }
 0x168   :  { %v585_v57 = vpop.permute.xlu1 %584  ;;  %v583_v58 = vpop.permute.xlu0 %582 }
 0x169   :  { %675 = vst.msk [vmem:[%s1611_s5 + $0x28] sm:$0xff] %vm60_vm0, %v585_v57  ;;  %674 = vst.msk [vmem:[%s1611_s5 + $0x20] sm:$0xff] %vm60_vm0, %v583_v58 }
 0x16c   :  { %v617_v59 = vpop.permute.xlu1 %616  ;;  %v615_v60 = vpop.permute.xlu0 %614 }
 0x16d   :  { %691 = vst.msk [vmem:[%s1611_s5 + $0xa8] sm:$0xff] %vm60_vm0, %v617_v59  ;;  %690 = vst.msk [vmem:[%s1611_s5 + $0xa0] sm:$0xff] %vm60_vm0, %v615_v60 }
 0x170   :  { %v461_v61 = vpop.permute.xlu1 %460  ;;  %v459_v62 = vpop.permute.xlu0 %458 }
 0x171   :  { %549 = vst.msk [vmem:[%s1610_s4 + $0x38] sm:$0xff] %vm60_vm0, %v461_v61  ;;  %548 = vst.msk [vmem:[%s1610_s4 + $0x30] sm:$0xff] %vm60_vm0, %v459_v62 }
 0x174   :  { %v493_v63 = vpop.permute.xlu1 %492  ;;  %v491_v0 = vpop.permute.xlu0 %490 }
 0x175   :  { %565 = vst.msk [vmem:[%s1610_s4 + $0xb8] sm:$0xff] %vm60_vm0, %v493_v63  ;;  %564 = vst.msk [vmem:[%s1610_s4 + $0xb0] sm:$0xff] %vm60_vm0, %v491_v0 }
 0x178   :  { %v589_v1 = vpop.permute.xlu1 %588  ;;  %v587_v2 = vpop.permute.xlu0 %586 }
 0x179   :  { %677 = vst.msk [vmem:[%s1611_s5 + $0x38] sm:$0xff] %vm60_vm0, %v589_v1  ;;  %676 = vst.msk [vmem:[%s1611_s5 + $0x30] sm:$0xff] %vm60_vm0, %v587_v2 }
 0x17c   :  { %v621_v3 = vpop.permute.xlu1 %620  ;;  %v619_v4 = vpop.permute.xlu0 %618 }
 0x17d   :  { %693 = vst.msk [vmem:[%s1611_s5 + $0xb8] sm:$0xff] %vm60_vm0, %v621_v3  ;;  %692 = vst.msk [vmem:[%s1611_s5 + $0xb0] sm:$0xff] %vm60_vm0, %v619_v4 }
 0x180   :  { %v465_v5 = vpop.permute.xlu1 %464  ;;  %v463_v6 = vpop.permute.xlu0 %462 }
 0x181   :  { %551 = vst.msk [vmem:[%s1610_s4 + $0x48] sm:$0xff] %vm60_vm0, %v465_v5  ;;  %550 = vst.msk [vmem:[%s1610_s4 + $0x40] sm:$0xff] %vm60_vm0, %v463_v6 }
 0x184   :  { %v497_v7 = vpop.permute.xlu1 %496  ;;  %v495_v8 = vpop.permute.xlu0 %494 }
 0x185   :  { %567 = vst.msk [vmem:[%s1610_s4 + $0xc8] sm:$0xff] %vm60_vm0, %v497_v7  ;;  %566 = vst.msk [vmem:[%s1610_s4 + $0xc0] sm:$0xff] %vm60_vm0, %v495_v8 }
 0x188   :  { %v593_v9 = vpop.permute.xlu1 %592  ;;  %v591_v10 = vpop.permute.xlu0 %590 }
 0x189   :  { %679 = vst.msk [vmem:[%s1611_s5 + $0x48] sm:$0xff] %vm60_vm0, %v593_v9  ;;  %678 = vst.msk [vmem:[%s1611_s5 + $0x40] sm:$0xff] %vm60_vm0, %v591_v10 }
 0x18c   :  { %v625_v11 = vpop.permute.xlu1 %624  ;;  %v623_v12 = vpop.permute.xlu0 %622 }
 0x18d   :  { %695 = vst.msk [vmem:[%s1611_s5 + $0xc8] sm:$0xff] %vm60_vm0, %v625_v11  ;;  %694 = vst.msk [vmem:[%s1611_s5 + $0xc0] sm:$0xff] %vm60_vm0, %v623_v12 }
 0x190   :  { %v469_v13 = vpop.permute.xlu1 %468  ;;  %v467_v14 = vpop.permute.xlu0 %466 }
 0x191   :  { %553 = vst.msk [vmem:[%s1610_s4 + $0x58] sm:$0xff] %vm60_vm0, %v469_v13  ;;  %552 = vst.msk [vmem:[%s1610_s4 + $0x50] sm:$0xff] %vm60_vm0, %v467_v14 }
 0x194   :  { %v501_v15 = vpop.permute.xlu1 %500  ;;  %v499_v16 = vpop.permute.xlu0 %498 }
 0x195   :  { %569 = vst.msk [vmem:[%s1610_s4 + $0xd8] sm:$0xff] %vm60_vm0, %v501_v15  ;;  %568 = vst.msk [vmem:[%s1610_s4 + $0xd0] sm:$0xff] %vm60_vm0, %v499_v16 }
 0x198   :  { %v597_v17 = vpop.permute.xlu1 %596  ;;  %v595_v18 = vpop.permute.xlu0 %594 }
 0x199   :  { %681 = vst.msk [vmem:[%s1611_s5 + $0x58] sm:$0xff] %vm60_vm0, %v597_v17  ;;  %680 = vst.msk [vmem:[%s1611_s5 + $0x50] sm:$0xff] %vm60_vm0, %v595_v18 }
 0x19c   :  { %v629_v19 = vpop.permute.xlu1 %628  ;;  %v627_v20 = vpop.permute.xlu0 %626 }
 0x19d   :  { %697 = vst.msk [vmem:[%s1611_s5 + $0xd8] sm:$0xff] %vm60_vm0, %v629_v19  ;;  %696 = vst.msk [vmem:[%s1611_s5 + $0xd0] sm:$0xff] %vm60_vm0, %v627_v20 }
 0x1a0   :  { %v473_v21 = vpop.permute.xlu1 %472  ;;  %v471_v22 = vpop.permute.xlu0 %470 }
 0x1a1   :  { %555 = vst.msk [vmem:[%s1610_s4 + $0x68] sm:$0xff] %vm60_vm0, %v473_v21  ;;  %554 = vst.msk [vmem:[%s1610_s4 + $0x60] sm:$0xff] %vm60_vm0, %v471_v22 }
 0x1a4   :  { %v505_v23 = vpop.permute.xlu1 %504  ;;  %v503_v24 = vpop.permute.xlu0 %502 }
 0x1a5   :  { %571 = vst.msk [vmem:[%s1610_s4 + $0xe8] sm:$0xff] %vm60_vm0, %v505_v23  ;;  %570 = vst.msk [vmem:[%s1610_s4 + $0xe0] sm:$0xff] %vm60_vm0, %v503_v24 }
 0x1a8   :  { %v601_v25 = vpop.permute.xlu1 %600  ;;  %v599_v26 = vpop.permute.xlu0 %598 }
 0x1a9   :  { %683 = vst.msk [vmem:[%s1611_s5 + $0x68] sm:$0xff] %vm60_vm0, %v601_v25  ;;  %682 = vst.msk [vmem:[%s1611_s5 + $0x60] sm:$0xff] %vm60_vm0, %v599_v26 }
 0x1ac   :  { %v633_v27 = vpop.permute.xlu1 %632  ;;  %v631_v28 = vpop.permute.xlu0 %630 }
 0x1ad   :  { %699 = vst.msk [vmem:[%s1611_s5 + $0xe8] sm:$0xff] %vm60_vm0, %v633_v27  ;;  %698 = vst.msk [vmem:[%s1611_s5 + $0xe0] sm:$0xff] %vm60_vm0, %v631_v28 }
 0x1b0   :  { %v477_v29 = vpop.permute.xlu1 %476  ;;  %v475_v30 = vpop.permute.xlu0 %474 }
 0x1b1   :  { %557 = vst.msk [vmem:[%s1610_s4 + $0x78] sm:$0xff] %vm60_vm0, %v477_v29  ;;  %556 = vst.msk [vmem:[%s1610_s4 + $0x70] sm:$0xff] %vm60_vm0, %v475_v30 }
 0x1b4   :  { %v509_v31 = vpop.permute.xlu1 %508  ;;  %v507_v32 = vpop.permute.xlu0 %506 }
 0x1b5   :  { %573 = vst.msk [vmem:[%s1610_s4 + $0xf8] sm:$0xff] %vm60_vm0, %v509_v31  ;;  %572 = vst.msk [vmem:[%s1610_s4 + $0xf0] sm:$0xff] %vm60_vm0, %v507_v32 }
 0x1b8   :  { %v605_v33 = vpop.permute.xlu1 %604  ;;  %v603_v34 = vpop.permute.xlu0 %602 }
 0x1b9   :  { %685 = vst.msk [vmem:[%s1611_s5 + $0x78] sm:$0xff] %vm60_vm0, %v605_v33  ;;  %684 = vst.msk [vmem:[%s1611_s5 + $0x70] sm:$0xff] %vm60_vm0, %v603_v34 }
 0x1bc   :  { %v637_v35 = vpop.permute.xlu1 %636  ;;  %v635_v37 = vpop.permute.xlu0 %634 }
 0x1bd   :  { %701 = vst.msk [vmem:[%s1611_s5 + $0xf8] sm:$0xff] %vm60_vm0, %v637_v35  ;;  %700 = vst.msk [vmem:[%s1611_s5 + $0xf0] sm:$0xff] %vm60_vm0, %v635_v37 }

</bundles_post_ra>
